<compile_context>
chip_gen: v5e
topology: v5e:2x2
jax: 0.10.0
libtpu: 0.0.40
codegen_flags: <defaults>
</compile_context>

<pallas_src>
import jax
import jax.numpy as jnp
from jax.experimental import pallas as pl
from jax.experimental.pallas import tpu as pltpu

_LANES = 128                        # lane width of a vreg
_TARGET_BLOCK_BYTES = 4 * 1024 * 1024   # ~4 MiB per input block
_MIN_GRID_STEPS = 4                 # keep a multi-step parallel grid for v7x (2 TCs)
_VMEM_LIMIT_BYTES = 32 * 1024 * 1024    # 16 MiB live (2x in + 2x out) + headroom


def _dtype_sublanes(dtype):
    """Native sublane packing multiple: 8 for 32-bit, 16 for 16-bit, 32 for 8-bit."""
    itemsize = jnp.dtype(dtype).itemsize
    return max(8, 32 // itemsize)


def _ode_kernel(params_ref, x_ref, o_ref):
    # params_ref is a (2,) f32 SMEM array: [alpha - 1, beta]
    alpha_m1 = params_ref[0]
    beta = params_ref[1]
    x = x_ref[...].astype(jnp.float32)
    o_ref[...] = (alpha_m1 * x + beta).astype(o_ref.dtype)


def dummy_ode_func_forward(t, x, alpha, beta, *, tile_rows=None):
    """Pallas implementation of DummyODEFunc.forward(t, x).

    `t` is unused (matches the PyTorch module). alpha/beta are scalar params.
    Works for any input shape/dtype; arithmetic is done in f32.
    """
    del t  # unused, as in the reference module

    orig_shape = x.shape
    orig_dtype = x.dtype
    total = x.size
    itemsize = jnp.dtype(orig_dtype).itemsize
    sublanes = _dtype_sublanes(orig_dtype)

    # --- lane-dense slab: flatten, pad (only if needed) to a lane multiple, view (rows, 128)
    x_flat = x.reshape(-1)
    pad = (-total) % _LANES
    if pad:
        x_flat = jnp.pad(x_flat, (0, pad))
    rows = (total + pad) // _LANES
    x2 = x_flat.reshape(rows, _LANES)

    # --- row tiling: ~4 MiB blocks, dtype-aware sublane multiple, >= _MIN_GRID_STEPS
    # grid steps whenever the slab is big enough to split (keeps both v7x TCs busy).
    max_tile_rows = max(sublanes, _TARGET_BLOCK_BYTES // (_LANES * itemsize))
    if tile_rows is None:
        tile_rows = min(rows, max_tile_rows)
        if rows > sublanes:
            per_step = pl.cdiv(rows, _MIN_GRID_STEPS)
            per_step = ((per_step + sublanes - 1) // sublanes) * sublanes
            tile_rows = min(tile_rows, per_step)
    tile_rows = int(tile_rows)
    if tile_rows >= rows:
        tile_rows = rows  # full-extent block (legal even when rows < sublanes)
    else:
        tile_rows = max(sublanes, (tile_rows // sublanes) * sublanes)
    grid = (pl.cdiv(rows, tile_rows),)

    # --- scalars: single (2,) f32 SMEM array [alpha - 1, beta]
    params = jnp.stack(
        [
            jnp.asarray(alpha, jnp.float32) - jnp.float32(1.0),
            jnp.asarray(beta, jnp.float32),
        ]
    )

    out2 = pl.pallas_call(
        _ode_kernel,
        out_shape=jax.ShapeDtypeStruct((rows, _LANES), orig_dtype),
        grid_spec=pltpu.PrefetchScalarGridSpec(
            num_scalar_prefetch=0,
            grid=grid,
            in_specs=[
                pl.BlockSpec((2,), lambda i: (0,), memory_space=pltpu.SMEM),
                pl.BlockSpec((tile_rows, _LANES), lambda i: (i, 0)),
            ],
            out_specs=pl.BlockSpec((tile_rows, _LANES), lambda i: (i, 0)),
        ),
        compiler_params=pltpu.CompilerParams(
            dimension_semantics=("parallel",),
            vmem_limit_bytes=_VMEM_LIMIT_BYTES,
        ),
    )(params, x2)

    out_flat = out2.reshape(-1)
    if pad:
        out_flat = out_flat[:total]
    return out_flat.reshape(orig_shape)


if __name__ == "__main__":
    key = jax.random.PRNGKey(0)

    # Small shape consistent with a graph-ODE node-feature matrix.
    N, F = 8, 32  # nodes, hidden features
    x = jax.random.normal(key, (N, F), dtype=jnp.float32)
    t = jnp.float32(0.0)

    # Parameter init matching nn.Parameter(torch.tensor(1.0 / 0.5)) in __init__.
    alpha_train = jnp.float32(1.0)
    beta_train = jnp.float32(0.5)

    out = dummy_ode_func_forward(t, x, alpha_train, beta_train)
    out = jax.block_until_ready(out)

    ref = alpha_train * x - x + beta_train
    assert out.shape == x.shape and out.dtype == x.dtype
    assert jnp.allclose(out, ref, atol=1e-5, rtol=1e-5)

    # Secondary check: non-trivial params + a shape exercising multi-step grid
    # and a ragged (partial) last block, without any pad (total % 128 == 0).
    key2 = jax.random.PRNGKey(1)
    x2 = jax.random.normal(key2, (200, 96), dtype=jnp.float32)
    a2, b2 = jnp.float32(1.7), jnp.float32(-0.3)
    out2 = jax.block_until_ready(dummy_ode_func_forward(t, x2, a2, b2))
    ref2 = a2 * x2 - x2 + b2
    assert out2.shape == x2.shape and out2.dtype == x2.dtype
    assert jnp.allclose(out2, ref2, atol=1e-5, rtol=1e-5)

    # Tertiary check: bf16 input exercising dtype-aware sublane rounding + padding.
    key3 = jax.random.PRNGKey(2)
    x3 = jax.random.normal(key3, (37, 50), dtype=jnp.bfloat16)
    a3, b3 = jnp.float32(0.25), jnp.float32(2.0)
    out3 = jax.block_until_ready(dummy_ode_func_forward(t, x3, a3, b3))
    ref3 = (a3 * x3.astype(jnp.float32) - x3.astype(jnp.float32) + b3).astype(jnp.bfloat16)
    assert out3.shape == x3.shape and out3.dtype == x3.dtype
    assert jnp.allclose(out3.astype(jnp.float32), ref3.astype(jnp.float32),
                        atol=2e-2, rtol=2e-2)

    print("KERNEL_OK")
</pallas_src>

<mosaic_0001>
module attributes {stable_mosaic.version = 11 : i64} {
  func.func @_ode_kernel(%arg0: i32, %arg1: memref<2xf32, #tpu.memory_space<smem>>, %arg2: memref<2x128xf32, #tpu.memory_space<vmem>>, %arg3: memref<2x128xf32, #tpu.memory_space<vmem>>) attributes {dimension_semantics = [#tpu.dimension_semantics<parallel>], iteration_bounds = array<i64: 1>, scalar_prefetch = 0 : i64, scratch_operands = 0 : i64, tpu.core_type = #tpu.core_type<tc>, window_params = [{transform_indices = @transform_0, window_bounds = array<i64: 2>}, {transform_indices = @transform_1, window_bounds = array<i64: 2, 128>}, {transform_indices = @transform_2, window_bounds = array<i64: 2, 128>}]} {
    %c0 = arith.constant 0 : index
    %0 = memref.load %arg1[%c0] : memref<2xf32, #tpu.memory_space<smem>>
    %c1 = arith.constant 1 : index
    %1 = memref.load %arg1[%c1] : memref<2xf32, #tpu.memory_space<smem>>
    %c0_0 = arith.constant 0 : index
    %c0_1 = arith.constant 0 : index
    %2 = vector.load %arg2[%c0_0, %c0_1] : memref<2x128xf32, #tpu.memory_space<vmem>>, vector<2x128xf32>
    %3 = vector.broadcast %0 : f32 to vector<2x128xf32>
    %4 = arith.mulf %3, %2 : vector<2x128xf32>
    %5 = vector.broadcast %1 : f32 to vector<2x128xf32>
    %6 = arith.addf %4, %5 : vector<2x128xf32>
    %c0_2 = arith.constant 0 : index
    %c0_3 = arith.constant 0 : index
    %7 = vector.load %arg3[%c0_2, %c0_3] : memref<2x128xf32, #tpu.memory_space<vmem>>, vector<2x128xf32>
    tpu.vector_store %arg3[%c0_2, %c0_3], %6 {strides = array<i32>} : memref<2x128xf32, #tpu.memory_space<vmem>>, vector<2x128xf32>,
    return
  }
  func.func @transform_0(%arg0: i32) -> i32 {
    %c0_i32 = arith.constant 0 : i32
    %c0_i32_0 = arith.constant 0 : i32
    return %c0_i32 : i32
  }
  func.func @transform_1(%arg0: i32) -> (i32, i32) {
    %c0_i32 = arith.constant 0 : i32
    %c0_i32_0 = arith.constant 0 : i32
    return %arg0, %c0_i32 : i32, i32
  }
  func.func @transform_2(%arg0: i32) -> (i32, i32) {
    %c0_i32 = arith.constant 0 : i32
    %c0_i32_0 = arith.constant 0 : i32
    return %arg0, %c0_i32 : i32, i32
  }
}

</mosaic_0001>

<bundles_post_ra>
// kernel: tpu_custom_call.1
= control target key start
LH: loop header
LB: loop body
LE: loop exit
PB: predicated region body
PF: predicated region fallthrough
CT: control target
= control target key end

     0   :  { %7 = vsyncpa [#allocation5], 0  ;;  %s162_s0 = inlined_call_operand.hbm [shape: f32[2], index: 0, kind: input, shape index: {}]   ;;  %s163_s1 = inlined_call_operand.hbm [shape: f32[2,128], index: 1, kind: input, shape index: {}]   ;;  %s164_s2 = inlined_call_operand.hbm [shape: f32[2,128], index: 2, kind: output, shape index: {}]  }
   0x1   :  { %8 = vsyncpa [#allocation3], 0 }
   0x2   :  { %9 = vsyncpa [#allocation4], 0  ;;  %s15_s11 = sshll.u32 %s162_s0, 4  ;;  %s24_s14 = sshll.u32 %s163_s1, 4  ;;  %s16_s11 = int_to_ptr.hbm [resolvable:$true] %s15_s11  ;;  %s25_s14 = int_to_ptr.hbm [resolvable:$true] %s24_s14 }
   0x3   :  { %s135_s15 = smov [#allocation2]   ;;  %s136_s16 = smov [#allocation6]  }
   0x4   :  { %18 = dma.hbm_to_smem %s16_s11, 16, %s135_s15, [#allocation5]  }
   0x5   :  { %s26_s17 = sshll.u32 %s136_s16, 4  ;;  %s27_s17 = int_to_ptr.vmem [resolvable:$true] %s26_s17 }
   0x6   :  { %29 = dma.hbm_to_vmem [thread:$0]  %s25_s14, 32, %s27_s17, [#allocation3]  }
   0x7   :  { %129 = dma.done.wait [#allocation5], 16  }
   0x8   :  { %130 = vsyncadd [#allocation5], 4294967280 }
   0x9   :  { %131 = dma.done.wait [#allocation3], 32  }
   0xa   :  { %132 = vsyncadd [#allocation3], 4294967264 }
   0xb   :  { %38 = sfence }
   0xc   :  { %s39_s18 = sld [smem:[#allocation2]]  ;;  %v41_v0 = vld [vmem:[#allocation6] sm:$0x3]  ;;  %s137_s0 = smov [#allocation7]  }
   0xd   :  { %s65_s19 = sld [smem:[#allocation2 + $0x1]]  ;;  %s52_s20 = sshll.u32 %s137_s0, 4  ;;  %s53_s20 = int_to_ptr.vmem [resolvable:$true] %s52_s20 }
   0xe   :  { %s54_s22 = sshll.u32 %s164_s2, 4  ;;  %s55_s22 = int_to_ptr.hbm [resolvable:$true] %s54_s22 }
  0x12   :  { %v42_v1 = vstv %s39_s18 }
  0x13   :  { %v43_v2 = vmul.f32 %v42_v1, %v41_v0  ;;  %v44_v3 = vstv %s65_s19 }
  0x15   :  { %v45_v4 = vadd.f32 %v44_v3, %v43_v2 }
  0x17   :  { %46 = vst [vmem:[#allocation7] sm:$0x3] %v45_v4 }
  0x18   :  { %57 = dma.vmem_to_hbm [thread:$0]  %s53_s20, 32, %s55_s22, [#allocation4]  }
  0x19   :  { %133 = dma.done.wait [#allocation4], 32  }
  0x1a   :  { %134 = vsyncadd [#allocation4], 4294967264 }
  0x1b   :  { %62 = vsyncpa [#allocation3], 1 }
  0x1c   :  { %63 = vsyncpa [#allocation4], 1 }
  0x1d   :  { %64 = vsyncpa [#allocation5], 1 }

</bundles_post_ra>
